<compile_context>
chip_gen: v7x
topology: tpu7x:2x2x1
jax: 0.10.0
libtpu: 0.0.40
codegen_flags: <defaults>
</compile_context>

<pallas_src>
import functools

import jax
import jax.numpy as jnp
from jax.experimental import pallas as pl
from jax.experimental.pallas import tpu as pltpu


# ----------------------------------------------------------------------------
# Kernel A: tiled matmul (im2col patches @ weight) + per-tile BN stat partials
# ----------------------------------------------------------------------------
def _conv_stats_kernel(a_ref, w_ref, o_ref, sum_ref, sq_ref):
    # bf16 x bf16 -> f32 accumulation on the MXU.
    acc = jnp.dot(a_ref[...], w_ref[...], preferred_element_type=jnp.float32)
    o_ref[...] = acc.astype(o_ref.dtype)  # bf16 conv intermediate (halves HBM write)
    # Per-(M-tile, Cout-tile) partial statistics (XLU cross-sublane reduction; MXU has the
    # critical path so this is filler work). Every grid cell writes its own block, so no
    # cross-step accumulator and no "arbitrary" grid axis is needed.
    sum_ref[...] = jnp.sum(acc, axis=0).reshape(1, 1, -1)
    sq_ref[...] = jnp.sum(acc * acc, axis=0).reshape(1, 1, -1)


def _round_up(x, m):
    return ((x + m - 1) // m) * m


def _im2col_nhwc(x_nhwc, k, stride, pad):
    """x_nhwc: [N, H, W, Cin] -> patches [N*Ho*Wo, k*k*Cin], K ordered (kh, kw, Cin)."""
    n, h, w, cin = x_nhwc.shape
    xp = jnp.pad(x_nhwc, ((0, 0), (pad, pad), (pad, pad), (0, 0)))
    ho = (h + 2 * pad - k) // stride + 1
    wo = (w + 2 * pad - k) // stride + 1
    cols = []
    for kh in range(k):
        for kw in range(k):
            cols.append(xp[:, kh:kh + stride * ho:stride, kw:kw + stride * wo:stride, :])
    patches = jnp.stack(cols, axis=3).reshape(n * ho * wo, k * k * cin)
    return patches, ho, wo


def _pick_tm(m_dim, k_dim, tn):
    """Largest M tile whose double-buffered working set stays well under the VMEM budget."""
    if m_dim < 512:
        return _round_up(m_dim, 16)  # single tile == full (padded) extent, bf16-friendly
    budget = 12 * 1024 * 1024  # leave headroom under the 32 MiB scoped limit (v5e/v6e/v7x)
    for tm in (1024, 512, 256):
        if m_dim < tm:
            continue
        working = 2 * (tm * k_dim * 2 + k_dim * tn * 2 + tm * tn * 2 + 2 * tn * 4)
        if working <= budget:
            return tm
    return 256


@functools.partial(jax.jit, static_argnames=("k", "stride", "eps"))
def conv2d_bn_relu(x_nchw, weight, gamma, beta, *, k, stride, eps=1e-5):
    """Forward of the PyTorch module (with_bn=True, training-mode BN statistics).

    x_nchw : [N, Cin, H, W] float32
    weight : [Cout, Cin, k, k] (PyTorch Conv2d layout)
    gamma, beta : [Cout]
    returns : [N, Cout, Ho, Wo] float32
    """
    n, cin, h, w = x_nchw.shape
    cout = weight.shape[0]
    pad = (k - 1) // 2

    # ---- glue: NCHW -> NHWC + bf16 cast (fused), im2col on bf16 ----
    x_nhwc = jnp.transpose(x_nchw, (0, 2, 3, 1)).astype(jnp.bfloat16)
    patches, ho, wo = _im2col_nhwc(x_nhwc, k, stride, pad)  # [M, K] bf16
    m_dim, k_dim = patches.shape

    # ---- tiling (K stays unpadded; Cout padded to the lane tile) ----
    tn = 256 if cout > 128 else 128                      # 256 fills the v6e/v7x MXU
    cp = _round_up(cout, tn)
    tm = _pick_tm(m_dim, k_dim, tn)                      # big M tile amortizes DMA setup
    mp = _round_up(m_dim, tm)
    ni = mp // tm
    nj = cp // tn

    # Single materialization of the patch matrix: pad M only (K == full extent is legal).
    a_bf = patches
    if mp != m_dim:
        a_bf = jnp.pad(a_bf, ((0, mp - m_dim), (0, 0)))

    # weight [Cout, Cin, kh, kw] -> [kh, kw, Cin, Cout] -> [K, Cout], bf16, pad Cout only.
    w_mat = jnp.transpose(weight.astype(jnp.float32), (2, 3, 1, 0)).reshape(k_dim, cout)
    w_bf = jnp.pad(w_mat.astype(jnp.bfloat16), ((0, 0), (0, cp - cout)))

    cost = pl.CostEstimate(
        flops=2 * mp * cp * k_dim,
        transcendentals=0,
        bytes_accessed=mp * k_dim * 2 + k_dim * cp * 2 + mp * cp * 2 + 2 * ni * cp * 4,
    )

    # ---- Pallas kernel A: conv matmul + BN stat partials ----
    conv_out, sum_parts, sq_parts = pl.pallas_call(
        _conv_stats_kernel,
        out_shape=(
            jax.ShapeDtypeStruct((mp, cp), jnp.bfloat16),
            jax.ShapeDtypeStruct((ni, 1, cp), jnp.float32),
            jax.ShapeDtypeStruct((ni, 1, cp), jnp.float32),
        ),
        grid_spec=pltpu.PrefetchScalarGridSpec(
            num_scalar_prefetch=0,
            grid=(nj, ni),  # Cout-tile outermost: weight block stays VMEM-resident over M
            in_specs=[
                pl.BlockSpec((tm, k_dim), lambda j, i: (i, 0)),   # patches (K unpadded)
                pl.BlockSpec((k_dim, tn), lambda j, i: (0, j)),   # weight
            ],
            out_specs=[
                pl.BlockSpec((tm, tn), lambda j, i: (i, j)),
                pl.BlockSpec((1, 1, tn), lambda j, i: (i, 0, j)),
                pl.BlockSpec((1, 1, tn), lambda j, i: (i, 0, j)),
            ],
        ),
        compiler_params=pltpu.CompilerParams(
            dimension_semantics=("parallel", "parallel"),
            vmem_limit_bytes=32 * 1024 * 1024,
        ),
        cost_estimate=cost,
    )(a_bf, w_bf)

    # ---- glue: reduce stat partials -> per-channel scale / shift ----
    # Padded M rows are all-zero patches and padded Cout columns are sliced away,
    # so they contribute nothing to the real-channel statistics.
    count = jnp.float32(m_dim)                                   # N * Ho * Wo
    ch_sum = jnp.sum(sum_parts, axis=(0, 1))[:cout]              # [Cout]
    ch_sq = jnp.sum(sq_parts, axis=(0, 1))[:cout]                # [Cout]
    mean = ch_sum / count
    var = jnp.maximum(ch_sq / count - mean * mean, 0.0)          # biased var, clamped >= 0
    scale = gamma.astype(jnp.float32) * jax.lax.rsqrt(var + jnp.float32(eps))
    shift = beta.astype(jnp.float32) - mean * scale

    # ---- glue: BN affine + ReLU fused with the unpad/reshape/transpose epilogue ----
    y = conv_out[:m_dim, :cout].astype(jnp.float32) * scale + shift
    y = jnp.maximum(y, jnp.float32(0.0))
    out_nhwc = y.reshape(n, ho, wo, cout)
    return jnp.transpose(out_nhwc, (0, 3, 1, 2))


def _reference(x_nchw, weight, gamma, beta, *, k, stride, eps=1e-5):
    """Pure-JAX f32 reference of the module forward (training-mode BN)."""
    pad = (k - 1) // 2
    conv = jax.lax.conv_general_dilated(
        x_nchw, weight, window_strides=(stride, stride),
        padding=((pad, pad), (pad, pad)),
        dimension_numbers=("NCHW", "OIHW", "NCHW"))
    mean = conv.mean(axis=(0, 2, 3), keepdims=True)
    var = conv.var(axis=(0, 2, 3), keepdims=True)  # biased
    bn = (conv - mean) * jax.lax.rsqrt(var + eps)
    bn = bn * gamma[None, :, None, None] + beta[None, :, None, None]
    return jnp.maximum(bn, 0.0)


if __name__ == "__main__":
    # Module hyper-params (small, consistent with the PyTorch module's __init__).
    k, inp_dim, out_dim, stride = 3, 4, 8, 1
    N, H, W = 2, 16, 16

    key = jax.random.PRNGKey(0)
    kx, kw_, kg, kb = jax.random.split(key, 4)

    x = jax.random.normal(kx, (N, inp_dim, H, W), dtype=jnp.float32)
    weight = jax.random.normal(kw_, (out_dim, inp_dim, k, k), dtype=jnp.float32) * 0.1
    gamma = 1.0 + 0.1 * jax.random.normal(kg, (out_dim,), dtype=jnp.float32)
    beta = 0.1 * jax.random.normal(kb, (out_dim,), dtype=jnp.float32)

    out = conv2d_bn_relu(x, weight, gamma, beta, k=k, stride=stride)
    out = jax.block_until_ready(out)

    assert out.shape == (N, out_dim, H, W), out.shape
    assert bool(jnp.all(out >= 0.0))  # ReLU check

    # Loose numerical check vs f32 reference (bf16 MXU operands -> small error expected).
    ref = _reference(x, weight, gamma, beta, k=k, stride=stride)
    max_err = float(jnp.max(jnp.abs(out - ref)))
    assert max_err < 1e-1, f"max abs err vs reference: {max_err}"

    print("KERNEL_OK")
</pallas_src>

<mosaic_0001>
module attributes {stable_mosaic.version = 11 : i64} {
  func.func @_conv_stats_kernel(%arg0: i32, %arg1: i32, %arg2: memref<512x36xbf16, #tpu.memory_space<vmem>>, %arg3: memref<36x128xbf16, #tpu.memory_space<vmem>>, %arg4: memref<512x128xbf16, #tpu.memory_space<vmem>>, %arg5: memref<1x1x128xf32, #tpu.memory_space<vmem>>, %arg6: memref<1x1x128xf32, #tpu.memory_space<vmem>>) attributes {dimension_semantics = [#tpu.dimension_semantics<parallel>, #tpu.dimension_semantics<parallel>], iteration_bounds = array<i64: 1, 1>, scalar_prefetch = 0 : i64, scratch_operands = 0 : i64, tpu.core_type = #tpu.core_type<tc>, window_params = [{transform_indices = @transform_0, window_bounds = array<i64: 512, 36>}, {transform_indices = @transform_1, window_bounds = array<i64: 36, 128>}, {transform_indices = @transform_2, window_bounds = array<i64: 512, 128>}, {transform_indices = @transform_3, window_bounds = array<i64: 1, 1, 128>}, {transform_indices = @transform_4, window_bounds = array<i64: 1, 1, 128>}]} {
    %c0 = arith.constant 0 : index
    %c0_0 = arith.constant 0 : index
    %0 = vector.load %arg2[%c0, %c0_0] : memref<512x36xbf16, #tpu.memory_space<vmem>>, vector<512x36xbf16>
    %c0_1 = arith.constant 0 : index
    %c0_2 = arith.constant 0 : index
    %1 = vector.load %arg3[%c0_1, %c0_2] : memref<36x128xbf16, #tpu.memory_space<vmem>>, vector<36x128xbf16>
    %cst = arith.constant dense<0.000000e+00> : vector<512x128xf32>
    %2 = tpu.matmul %0, %1, %cst {dimension_numbers = #tpu.dot_dimension_numbers<[1], [0], [0], [1], [0, 0, 1, 1], [], []>} : vector<512x36xbf16>, vector<36x128xbf16>, vector<512x128xf32> -> vector<512x128xf32>
    %3 = arith.truncf %2 : vector<512x128xf32> to vector<512x128xbf16>
    %c0_3 = arith.constant 0 : index
    %c0_4 = arith.constant 0 : index
    %4 = vector.load %arg4[%c0_3, %c0_4] : memref<512x128xbf16, #tpu.memory_space<vmem>>, vector<512x128xbf16>
    tpu.vector_store %arg4[%c0_3, %c0_4], %3 {strides = array<i32>} : memref<512x128xbf16, #tpu.memory_space<vmem>>, vector<512x128xbf16>,
    %cst_5 = arith.constant dense<0.000000e+00> : vector<128xf32>
    %5 = vector.multi_reduction <add>, %2, %cst_5 [0] : vector<512x128xf32> to vector<128xf32>
    %6 = vector.shape_cast %5 : vector<128xf32> to vector<1x1x128xf32>
    %c0_6 = arith.constant 0 : index
    %c0_7 = arith.constant 0 : index
    %c0_8 = arith.constant 0 : index
    %7 = vector.load %arg5[%c0_6, %c0_7, %c0_8] : memref<1x1x128xf32, #tpu.memory_space<vmem>>, vector<1x1x128xf32>
    tpu.vector_store %arg5[%c0_6, %c0_7, %c0_8], %6 {strides = array<i32>} : memref<1x1x128xf32, #tpu.memory_space<vmem>>, vector<1x1x128xf32>,
    %8 = arith.mulf %2, %2 : vector<512x128xf32>
    %cst_9 = arith.constant dense<0.000000e+00> : vector<128xf32>
    %9 = vector.multi_reduction <add>, %8, %cst_9 [0] : vector<512x128xf32> to vector<128xf32>
    %10 = vector.shape_cast %9 : vector<128xf32> to vector<1x1x128xf32>
    %c0_10 = arith.constant 0 : index
    %c0_11 = arith.constant 0 : index
    %c0_12 = arith.constant 0 : index
    %11 = vector.load %arg6[%c0_10, %c0_11, %c0_12] : memref<1x1x128xf32, #tpu.memory_space<vmem>>, vector<1x1x128xf32>
    tpu.vector_store %arg6[%c0_10, %c0_11, %c0_12], %10 {strides = array<i32>} : memref<1x1x128xf32, #tpu.memory_space<vmem>>, vector<1x1x128xf32>,
    return
  }
  func.func @transform_0(%arg0: i32, %arg1: i32) -> (i32, i32) {
    %c0_i32 = arith.constant 0 : i32
    %c0_i32_0 = arith.constant 0 : i32
    return %arg1, %c0_i32 : i32, i32
  }
  func.func @transform_1(%arg0: i32, %arg1: i32) -> (i32, i32) {
    %c0_i32 = arith.constant 0 : i32
    %c0_i32_0 = arith.constant 0 : i32
    return %c0_i32, %arg0 : i32, i32
  }
  func.func @transform_2(%arg0: i32, %arg1: i32) -> (i32, i32) {
    %c0_i32 = arith.constant 0 : i32
    return %arg1, %arg0 : i32, i32
  }
  func.func @transform_3(%arg0: i32, %arg1: i32) -> (i32, i32, i32) {
    %c0_i32 = arith.constant 0 : i32
    %c0_i32_0 = arith.constant 0 : i32
    return %arg1, %c0_i32, %arg0 : i32, i32, i32
  }
  func.func @transform_4(%arg0: i32, %arg1: i32) -> (i32, i32, i32) {
    %c0_i32 = arith.constant 0 : i32
    %c0_i32_0 = arith.constant 0 : i32
    return %arg1, %c0_i32, %arg0 : i32, i32, i32
  }
}

</mosaic_0001>

<bundles_post_ra>
// kernel: conv2d_bn_relu.1
= control target key start
LH: loop header
LB: loop body
LE: loop exit
PB: predicated region body
PF: predicated region fallthrough
CT: control target
= control target key end

     0   :  { %vm259_vm0 = vcmask 293888   ;;  %vm356_vm1 = vcmask 1041408   ;;  %s2175_s1 = inlined_call_operand.vmem [shape: bf16[36,128], index: 1, kind: input, shape index: {}]   ;;  %s2176_s0 = inlined_call_operand.vmem [shape: bf16[512,36], index: 0, kind: input, shape index: {}]   ;;  %s2177_s2 = inlined_call_operand.vmem [shape: bf16[512,128], index: 2, kind: output, shape index: {0}]   ;;  %s2178_s3 = inlined_call_operand.vmem [shape: f32[1,1,128], index: 3, kind: output, shape index: {1}]   ;;  %s2179_s4 = inlined_call_operand.vmem [shape: f32[1,1,128], index: 4, kind: output, shape index: {2}]  }
   0x1   :  { %v1684_v0 = vld [vmem:[%s2175_s1] sm:$0xff]   ;;  %v1685_v1 = vld [vmem:[%s2175_s1 + $0x8] sm:$0xff]   ;;  %v1686_v2 = vld [vmem:[%s2175_s1 + $0x10] ss:$0 sps:$4 sm:$0x33]  }
   0x2   :  { %1606 = vmatprep.subr.bf16.mxu0 %v1684_v0  ;;  %v1687_v3 = vld [vmem:[%s2176_s0] sm:$0xff]   ;;  %1676 = vmatprep.subr.bf16.mxu1 %v1684_v0  ;;  %v358_v4 = vsel %vm356_vm1, %v1686_v2, 0  ;;  %v1688_v5 = vld [vmem:[%s2176_s0 + $0x8] sm:$0xff]   ;;  %v1689_v6 = vld [vmem:[%s2176_s0 + $0x10] sm:$0xff]  }
   0x3   :  { %1607 = vmatpush3.bf16.msra.mxu0 %v1684_v0  ;;  %1679 = vmatpush3.bf16.msra.mxu1 %v1684_v0  ;;  %v1690_v7 = vld [vmem:[%s2176_s0 + $0x18] sm:$0xff]   ;;  %v1691_v8 = vld [vmem:[%s2176_s0 + $0x20] sm:$0xff]   ;;  %v1704_v10 = vld [vmem:[%s2176_s0 + $0x88] sm:$0xff]  }
   0x4   :  { %1608 = vmatprep.subr.bf16.mxu0 %v1685_v1  ;;  %1612 = vmatprep.mubr.msk.bf16.mxu0 %vm259_vm0, %v1687_v3  ;;  %v1703_v9 = vld [vmem:[%s2176_s0 + $0x80] sm:$0xff]   ;;  %v1705_v11 = vld [vmem:[%s2176_s0 + $0x90] sm:$0xff]   ;;  %v1692_v12 = vld [vmem:[%s2176_s0 + $0x28] sm:$0xff]  }
   0x5   :  { %1677 = vmatprep.subr.bf16.mxu1 %v1685_v1  ;;  %1644 = vmatprep.mubr.msk.bf16.mxu1 %vm259_vm0, %v1703_v9  ;;  %v1693_v13 = vld [vmem:[%s2176_s0 + $0x30] sm:$0xff]   ;;  %v1706_v14 = vld [vmem:[%s2176_s0 + $0x98] sm:$0xff]   ;;  %v1707_v15 = vld [vmem:[%s2176_s0 + $0xa0] sm:$0xff]  }
   0x6   :  { %v1694_v16 = vld [vmem:[%s2176_s0 + $0x38] sm:$0xff]   ;;  %v1708_v17 = vld [vmem:[%s2176_s0 + $0xa8] sm:$0xff]   ;;  %v1695_v18 = vld [vmem:[%s2176_s0 + $0x40] sm:$0xff]  }
   0x7   :  { %1609 = vmatpush3.bf16.msra.mxu0 %v1685_v1  ;;  %1680 = vmatpush3.bf16.msra.mxu1 %v1685_v1  ;;  %v1709_v19 = vld [vmem:[%s2176_s0 + $0xb0] sm:$0xff]   ;;  %v1696_v20 = vld [vmem:[%s2176_s0 + $0x48] sm:$0xff]   ;;  %v1710_v21 = vld [vmem:[%s2176_s0 + $0xb8] sm:$0xff]  }
   0x8   :  { %1682 = vmatprep.subr.msk.bf16.mxu0 %vm356_vm1, %v1686_v2  ;;  %1683 = vmatprep.subr.msk.bf16.mxu1 %vm356_vm1, %v1686_v2  ;;  %v1697_v22 = vld [vmem:[%s2176_s0 + $0x50] sm:$0xff]   ;;  %v1711_v23 = vld [vmem:[%s2176_s0 + $0xc0] sm:$0xff]   ;;  %v1698_v24 = vld [vmem:[%s2176_s0 + $0x58] sm:$0xff]  }
   0x9   :  { %v1712_v25 = vld [vmem:[%s2176_s0 + $0xc8] sm:$0xff]   ;;  %v1699_v26 = vld [vmem:[%s2176_s0 + $0x60] sm:$0xff]   ;;  %v1713_v27 = vld [vmem:[%s2176_s0 + $0xd0] sm:$0xff]  }
   0xa   :  { %v1700_v28 = vld [vmem:[%s2176_s0 + $0x68] sm:$0xff]   ;;  %v1714_v29 = vld [vmem:[%s2176_s0 + $0xd8] sm:$0xff]   ;;  %v1701_v30 = vld [vmem:[%s2176_s0 + $0x70] sm:$0xff]  }
   0xb   :  { %1611 = vmatpush3.bf16.msra.mxu0 %v358_v4  ;;  %1681 = vmatpush3.bf16.msra.mxu1 %v358_v4  ;;  %v1715_v31 = vld [vmem:[%s2176_s0 + $0xe0] sm:$0xff]   ;;  %v1702_v32 = vld [vmem:[%s2176_s0 + $0x78] sm:$0xff]   ;;  %v1716_v33 = vld [vmem:[%s2176_s0 + $0xe8] sm:$0xff]  }
   0xc   :  { %v1717_v34 = vld [vmem:[%s2176_s0 + $0xf0] sm:$0xff]   ;;  %v1718_v35 = vld [vmem:[%s2176_s0 + $0xf8] sm:$0xff]  }
   0xe   :  { %1613 = vmatmul.mubr.msk.bf16.vlgmr.msra.gmra.mrb[0].mxu0 %vm259_vm0, %v1688_v5  ;;  %1645 = vmatmul.mubr.msk.bf16.vlgmr.msra.gmra.mrb[0].mxu1 %vm259_vm0, %v1704_v10 }
   0xf   :  { %1616 = vmatprep.mubr.msk.bf16.mxu0 %vm259_vm0, %v1689_v6  ;;  %1648 = vmatprep.mubr.msk.bf16.mxu1 %vm259_vm0, %v1705_v11 }
  0x16   :  { %1617 = vmatmul.mubr.msk.bf16.gmra.mrb[4].mxu0 %vm259_vm0, %v1690_v7  ;;  %1649 = vmatmul.mubr.msk.bf16.gmra.mrb[4].mxu1 %vm259_vm0, %v1706_v14 }
  0x17   :  { %1620 = vmatprep.mubr.msk.bf16.mxu0 %vm259_vm0, %v1691_v8  ;;  %1652 = vmatprep.mubr.msk.bf16.mxu1 %vm259_vm0, %v1707_v15 }
  0x1e   :  { %1621 = vmatmul.mubr.msk.bf16.gmra.mrb[8].mxu0 %vm259_vm0, %v1692_v12  ;;  %1653 = vmatmul.mubr.msk.bf16.gmra.mrb[8].mxu1 %vm259_vm0, %v1708_v17 }
  0x1f   :  { %1624 = vmatprep.mubr.msk.bf16.mxu0 %vm259_vm0, %v1693_v13  ;;  %1656 = vmatprep.mubr.msk.bf16.mxu1 %vm259_vm0, %v1709_v19 }
  0x26   :  { %1625 = vmatmul.mubr.msk.bf16.gmra.mrb[12].mxu0 %vm259_vm0, %v1694_v16  ;;  %1657 = vmatmul.mubr.msk.bf16.gmra.mrb[12].mxu1 %vm259_vm0, %v1710_v21 }
  0x27   :  { %1628 = vmatprep.mubr.msk.bf16.mxu0 %vm259_vm0, %v1695_v18  ;;  %1660 = vmatprep.mubr.msk.bf16.mxu1 %vm259_vm0, %v1711_v23 }
  0x2e   :  { %1629 = vmatmul.mubr.msk.bf16.gmra.mrb[16].mxu0 %vm259_vm0, %v1696_v20  ;;  %1661 = vmatmul.mubr.msk.bf16.gmra.mrb[16].mxu1 %vm259_vm0, %v1712_v25 }
  0x2f   :  { %1632 = vmatprep.mubr.msk.bf16.mxu0 %vm259_vm0, %v1697_v22  ;;  %1664 = vmatprep.mubr.msk.bf16.mxu1 %vm259_vm0, %v1713_v27 }
  0x36   :  { %1633 = vmatmul.mubr.msk.bf16.gmra.mrb[20].mxu0 %vm259_vm0, %v1698_v24  ;;  %1665 = vmatmul.mubr.msk.bf16.gmra.mrb[20].mxu1 %vm259_vm0, %v1714_v29 }
  0x37   :  { %1636 = vmatprep.mubr.msk.bf16.mxu0 %vm259_vm0, %v1699_v26  ;;  %1668 = vmatprep.mubr.msk.bf16.mxu1 %vm259_vm0, %v1715_v31 }
  0x3e   :  { %1637 = vmatmul.mubr.msk.bf16.gmra.mrb[24].mxu0 %vm259_vm0, %v1700_v28  ;;  %1669 = vmatmul.mubr.msk.bf16.gmra.mrb[24].mxu1 %vm259_vm0, %v1716_v33 }
  0x3f   :  { %1640 = vmatprep.mubr.msk.bf16.mxu0 %vm259_vm0, %v1701_v30  ;;  %1672 = vmatprep.mubr.msk.bf16.mxu1 %vm259_vm0, %v1717_v34 }
  0x46   :  { %1641 = vmatmul.mubr.msk.bf16.gmra.mrb[28].mxu0 %vm259_vm0, %v1702_v32  ;;  %1673 = vmatmul.mubr.msk.bf16.gmra.mrb[28].mxu1 %vm259_vm0, %v1718_v35 }
  0xe1   :  { %v1614_v36 = vpop.f32.mrb[0].mxu0  ;;  %v1887_v52 = vpop.f32.mrb[0].mxu1 }
  0xe2   :  { %v394_v37 = vpop.f32.mrb[1].mxu0  ;;  %v1041_v45 = vmul.f32 %v1614_v36, %v1614_v36  ;;  %v1889_v54 = vpop.f32.mrb[1].mxu1 }
  0xe3   :  { %v1615_v38 = vpop.f32.mrb[2].mxu0  ;;  %v1039_v41 = vmul.f32 %v394_v37, %v394_v37  ;;  %v1891_v59 = vpop.f32.mrb[2].mxu1 }
  0xe4   :  { %v1388_v39 = vpack.c.bf16 %v1615_v38, %v1614_v36  ;;  %v397_v40 = vpop.f32.mrb[3].mxu0  ;;  %v1042_v48 = vmul.f32 %v1615_v38, %v1615_v38  ;;  %v1468_v62 = vpack.c.bf16 %v1891_v59, %v1887_v52  ;;  %v1895_v63 = vpop.f32.mrb[3].mxu1 }
  0xe5   :  { %v1383_v42 = vpack.c.bf16 %v397_v40, %v394_v37  ;;  %v969_v43 = vadd.f32 %v397_v40, %v394_v37  ;;  %v1040_v44 = vmul.f32 %v397_v40, %v397_v40  ;;  %v1463_v4 = vpack.c.bf16 %v1895_v63, %v1889_v54 }
  0xe6   :  { %1540 = vst [vmem:[%s2177_s2 + $0x8] sm:$0xff] %v1388_v39   ;;  %1556 = vst [vmem:[%s2177_s2 + $0x88] sm:$0xff] %v1468_v62  }
  0xe7   :  { %1384 = vst [vmem:[%s2177_s2] sm:$0xff] %v1383_v42   ;;  %v970_v46 = vadd.f32 %v1614_v36, %v969_v43  ;;  %v1103_v47 = vadd.f32 %v1040_v44, %v1039_v41  ;;  %1555 = vst [vmem:[%s2177_s2 + $0x80] sm:$0xff] %v1463_v4  }
  0xe9   :  { %v1104_v49 = vadd.f32 %v1103_v47, %v1041_v45  ;;  %v1618_v50 = vpop.f32.mrb[4].mxu0  ;;  %v971_v51 = vadd.f32 %v1615_v38, %v970_v46  ;;  %v1911_v12 = vpop.f32.mrb[4].mxu1 }
  0xea   :  { %v410_v53 = vpop.f32.mrb[5].mxu0  ;;  %v1045_v5 = vmul.f32 %v1618_v50, %v1618_v50  ;;  %v1913_v14 = vpop.f32.mrb[5].mxu1 }
  0xeb   :  { %v972_v55 = vadd.f32 %v971_v51, %v410_v53  ;;  %v1043_v56 = vmul.f32 %v410_v53, %v410_v53  ;;  %v1105_v57 = vadd.f32 %v1104_v49, %v1042_v48  ;;  %v1619_v58 = vpop.f32.mrb[6].mxu0  ;;  %v1915_v19 = vpop.f32.mrb[6].mxu1 }
  0xec   :  { %v1398_v60 = vpack.c.bf16 %v1619_v58, %v1618_v50  ;;  %v413_v61 = vpop.f32.mrb[7].mxu0  ;;  %v1046_v8 = vmul.f32 %v1619_v58, %v1619_v58  ;;  %v1478_v22 = vpack.c.bf16 %v1915_v19, %v1911_v12  ;;  %v1919_v23 = vpop.f32.mrb[7].mxu1 }
  0xed   :  { %v1106_v0 = vadd.f32 %v1105_v57, %v1043_v56  ;;  %v1393_v1 = vpack.c.bf16 %v413_v61, %v410_v53  ;;  %v973_v2 = vadd.f32 %v972_v55, %v413_v61  ;;  %v1044_v3 = vmul.f32 %v413_v61, %v413_v61 }
  0xee   :  { %1542 = vst [vmem:[%s2177_s2 + $0x18] sm:$0xff] %v1398_v60   ;;  %1558 = vst [vmem:[%s2177_s2 + $0x98] sm:$0xff] %v1478_v22   ;;  %v1473_v28 = vpack.c.bf16 %v1919_v23, %v1913_v14 }
  0xef   :  { %1541 = vst [vmem:[%s2177_s2 + $0x10] sm:$0xff] %v1393_v1   ;;  %v974_v6 = vadd.f32 %v1618_v50, %v973_v2  ;;  %v1107_v7 = vadd.f32 %v1106_v0, %v1044_v3 }
  0xf0   :  { %1557 = vst [vmem:[%s2177_s2 + $0x90] sm:$0xff] %v1473_v28  }
  0xf1   :  { %v1108_v9 = vadd.f32 %v1107_v7, %v1045_v5  ;;  %v1622_v10 = vpop.f32.mrb[8].mxu0  ;;  %v975_v11 = vadd.f32 %v1619_v58, %v974_v6  ;;  %v1935_v36 = vpop.f32.mrb[8].mxu1 }
  0xf2   :  { %v426_v13 = vpop.f32.mrb[9].mxu0  ;;  %v1049_v29 = vmul.f32 %v1622_v10, %v1622_v10  ;;  %v1937_v38 = vpop.f32.mrb[9].mxu1 }
  0xf3   :  { %v976_v15 = vadd.f32 %v975_v11, %v426_v13  ;;  %v1047_v16 = vmul.f32 %v426_v13, %v426_v13  ;;  %v1109_v17 = vadd.f32 %v1108_v9, %v1046_v8  ;;  %v1623_v18 = vpop.f32.mrb[10].mxu0  ;;  %v1939_v43 = vpop.f32.mrb[10].mxu1 }
  0xf4   :  { %v1408_v20 = vpack.c.bf16 %v1623_v18, %v1622_v10  ;;  %v429_v21 = vpop.f32.mrb[11].mxu0  ;;  %v1050_v32 = vmul.f32 %v1623_v18, %v1623_v18  ;;  %v1488_v46 = vpack.c.bf16 %v1939_v43, %v1935_v36  ;;  %v1943_v47 = vpop.f32.mrb[11].mxu1 }
  0xf5   :  { %v1110_v24 = vadd.f32 %v1109_v17, %v1047_v16  ;;  %v1403_v25 = vpack.c.bf16 %v429_v21, %v426_v13  ;;  %v977_v26 = vadd.f32 %v976_v15, %v429_v21  ;;  %v1048_v27 = vmul.f32 %v429_v21, %v429_v21 }
  0xf6   :  { %1544 = vst [vmem:[%s2177_s2 + $0x28] sm:$0xff] %v1408_v20   ;;  %1560 = vst [vmem:[%s2177_s2 + $0xa8] sm:$0xff] %v1488_v46   ;;  %v1483_v53 = vpack.c.bf16 %v1943_v47, %v1937_v38 }
  0xf7   :  { %1543 = vst [vmem:[%s2177_s2 + $0x20] sm:$0xff] %v1403_v25   ;;  %v978_v30 = vadd.f32 %v1622_v10, %v977_v26  ;;  %v1111_v31 = vadd.f32 %v1110_v24, %v1048_v27 }
  0xf8   :  { %1559 = vst [vmem:[%s2177_s2 + $0xa0] sm:$0xff] %v1483_v53  }
  0xf9   :  { %v1112_v33 = vadd.f32 %v1111_v31, %v1049_v29  ;;  %v1626_v34 = vpop.f32.mrb[12].mxu0  ;;  %v979_v35 = vadd.f32 %v1623_v18, %v978_v30  ;;  %v1959_v0 = vpop.f32.mrb[12].mxu1 }
  0xfa   :  { %v442_v37 = vpop.f32.mrb[13].mxu0  ;;  %v1053_v55 = vmul.f32 %v1626_v34, %v1626_v34  ;;  %v1961_v2 = vpop.f32.mrb[13].mxu1 }
  0xfb   :  { %v980_v39 = vadd.f32 %v979_v35, %v442_v37  ;;  %v1051_v40 = vmul.f32 %v442_v37, %v442_v37  ;;  %v1113_v41 = vadd.f32 %v1112_v33, %v1050_v32  ;;  %v1627_v42 = vpop.f32.mrb[14].mxu0  ;;  %v1963_v7 = vpop.f32.mrb[14].mxu1 }
  0xfc   :  { %v1418_v44 = vpack.c.bf16 %v1627_v42, %v1626_v34  ;;  %v445_v45 = vpop.f32.mrb[15].mxu0  ;;  %v1054_v58 = vmul.f32 %v1627_v42, %v1627_v42  ;;  %v1498_v10 = vpack.c.bf16 %v1963_v7, %v1959_v0  ;;  %v1967_v11 = vpop.f32.mrb[15].mxu1 }
  0xfd   :  { %v1114_v48 = vadd.f32 %v1113_v41, %v1051_v40  ;;  %v1413_v49 = vpack.c.bf16 %v445_v45, %v442_v37  ;;  %v981_v50 = vadd.f32 %v980_v39, %v445_v45  ;;  %v1052_v51 = vmul.f32 %v445_v45, %v445_v45 }
  0xfe   :  { %1546 = vst [vmem:[%s2177_s2 + $0x38] sm:$0xff] %v1418_v44   ;;  %1562 = vst [vmem:[%s2177_s2 + $0xb8] sm:$0xff] %v1498_v10   ;;  %v1493_v18 = vpack.c.bf16 %v1967_v11, %v1961_v2 }
  0xff   :  { %1545 = vst [vmem:[%s2177_s2 + $0x30] sm:$0xff] %v1413_v49   ;;  %v982_v56 = vadd.f32 %v1626_v34, %v981_v50  ;;  %v1115_v57 = vadd.f32 %v1114_v48, %v1052_v51 }
 0x100   :  { %1561 = vst [vmem:[%s2177_s2 + $0xb0] sm:$0xff] %v1493_v18  }
 0x101   :  { %v1116_v60 = vadd.f32 %v1115_v57, %v1053_v55  ;;  %v1630_v61 = vpop.f32.mrb[16].mxu0  ;;  %v983_v62 = vadd.f32 %v1627_v42, %v982_v56  ;;  %v1983_v28 = vpop.f32.mrb[16].mxu1 }
 0x102   :  { %v458_v1 = vpop.f32.mrb[17].mxu0  ;;  %v1057_v20 = vmul.f32 %v1630_v61, %v1630_v61  ;;  %v1985_v30 = vpop.f32.mrb[17].mxu1 }
 0x103   :  { %v984_v3 = vadd.f32 %v983_v62, %v458_v1  ;;  %v1055_v4 = vmul.f32 %v458_v1, %v458_v1  ;;  %v1117_v5 = vadd.f32 %v1116_v60, %v1054_v58  ;;  %v1631_v6 = vpop.f32.mrb[18].mxu0  ;;  %v1987_v35 = vpop.f32.mrb[18].mxu1 }
 0x104   :  { %v1428_v8 = vpack.c.bf16 %v1631_v6, %v1630_v61  ;;  %v461_v9 = vpop.f32.mrb[19].mxu0  ;;  %v1058_v24 = vmul.f32 %v1631_v6, %v1631_v6  ;;  %v1508_v40 = vpack.c.bf16 %v1987_v35, %v1983_v28  ;;  %v1991_v41 = vpop.f32.mrb[19].mxu1 }
 0x105   :  { %v1118_v13 = vadd.f32 %v1117_v5, %v1055_v4  ;;  %v1423_v15 = vpack.c.bf16 %v461_v9, %v458_v1  ;;  %v985_v16 = vadd.f32 %v984_v3, %v461_v9  ;;  %v1056_v17 = vmul.f32 %v461_v9, %v461_v9 }
 0x106   :  { %1548 = vst [vmem:[%s2177_s2 + $0x48] sm:$0xff] %v1428_v8   ;;  %1564 = vst [vmem:[%s2177_s2 + $0xc8] sm:$0xff] %v1508_v40   ;;  %v1503_v48 = vpack.c.bf16 %v1991_v41, %v1985_v30 }
 0x107   :  { %1547 = vst [vmem:[%s2177_s2 + $0x40] sm:$0xff] %v1423_v15   ;;  %v986_v21 = vadd.f32 %v1630_v61, %v985_v16  ;;  %v1119_v22 = vadd.f32 %v1118_v13, %v1056_v17 }
 0x108   :  { %1563 = vst [vmem:[%s2177_s2 + $0xc0] sm:$0xff] %v1503_v48  }
 0x109   :  { %v1120_v25 = vadd.f32 %v1119_v22, %v1057_v20  ;;  %v1634_v26 = vpop.f32.mrb[20].mxu0  ;;  %v987_v27 = vadd.f32 %v1631_v6, %v986_v21  ;;  %v2007_v58 = vpop.f32.mrb[20].mxu1 }
 0x10a   :  { %v474_v29 = vpop.f32.mrb[21].mxu0  ;;  %v1061_v49 = vmul.f32 %v1634_v26, %v1634_v26  ;;  %v2009_v61 = vpop.f32.mrb[21].mxu1 }
 0x10b   :  { %v988_v31 = vadd.f32 %v987_v27, %v474_v29  ;;  %v1059_v32 = vmul.f32 %v474_v29, %v474_v29  ;;  %v1121_v33 = vadd.f32 %v1120_v25, %v1058_v24  ;;  %v1635_v34 = vpop.f32.mrb[22].mxu0  ;;  %v2011_v5 = vpop.f32.mrb[22].mxu1 }
 0x10c   :  { %v1438_v37 = vpack.c.bf16 %v1635_v34, %v1634_v26  ;;  %v477_v39 = vpop.f32.mrb[23].mxu0  ;;  %v1062_v53 = vmul.f32 %v1635_v34, %v1635_v34  ;;  %v1518_v9 = vpack.c.bf16 %v2011_v5, %v2007_v58  ;;  %v2015_v10 = vpop.f32.mrb[23].mxu1 }
 0x10d   :  { %v1122_v42 = vadd.f32 %v1121_v33, %v1059_v32  ;;  %v1433_v44 = vpack.c.bf16 %v477_v39, %v474_v29  ;;  %v989_v45 = vadd.f32 %v988_v31, %v477_v39  ;;  %v1060_v46 = vmul.f32 %v477_v39, %v477_v39 }
 0x10e   :  { %1550 = vst [vmem:[%s2177_s2 + $0x58] sm:$0xff] %v1438_v37   ;;  %1566 = vst [vmem:[%s2177_s2 + $0xd8] sm:$0xff] %v1518_v9   ;;  %v1513_v18 = vpack.c.bf16 %v2015_v10, %v2009_v61 }
 0x10f   :  { %1549 = vst [vmem:[%s2177_s2 + $0x50] sm:$0xff] %v1433_v44   ;;  %v990_v50 = vadd.f32 %v1634_v26, %v989_v45  ;;  %v1123_v51 = vadd.f32 %v1122_v42, %v1060_v46 }
 0x110   :  { %1565 = vst [vmem:[%s2177_s2 + $0xd0] sm:$0xff] %v1513_v18  }
 0x111   :  { %v1124_v55 = vadd.f32 %v1123_v51, %v1061_v49  ;;  %v1638_v56 = vpop.f32.mrb[24].mxu0  ;;  %v991_v57 = vadd.f32 %v1635_v34, %v990_v50  ;;  %v2031_v29 = vpop.f32.mrb[24].mxu1 }
 0x112   :  { %v490_v60 = vpop.f32.mrb[25].mxu0  ;;  %v1065_v20 = vmul.f32 %v1638_v56, %v1638_v56  ;;  %v2033_v32 = vpop.f32.mrb[25].mxu1 }
 0x113   :  { %v992_v62 = vadd.f32 %v991_v57, %v490_v60  ;;  %v1063_v1 = vmul.f32 %v490_v60, %v490_v60  ;;  %v1125_v3 = vadd.f32 %v1124_v55, %v1062_v53  ;;  %v1639_v4 = vpop.f32.mrb[26].mxu0  ;;  %v2035_v40 = vpop.f32.mrb[26].mxu1 }
 0x114   :  { %v1448_v6 = vpack.c.bf16 %v1639_v4, %v1638_v56  ;;  %v493_v8 = vpop.f32.mrb[27].mxu0  ;;  %v1066_v24 = vmul.f32 %v1639_v4, %v1639_v4  ;;  %v1528_v45 = vpack.c.bf16 %v2035_v40, %v2031_v29  ;;  %v2039_v46 = vpop.f32.mrb[27].mxu1 }
 0x115   :  { %v1126_v13 = vadd.f32 %v1125_v3, %v1063_v1  ;;  %v1443_v15 = vpack.c.bf16 %v493_v8, %v490_v60  ;;  %v993_v16 = vadd.f32 %v992_v62, %v493_v8  ;;  %v1064_v17 = vmul.f32 %v493_v8, %v493_v8 }
 0x116   :  { %1552 = vst [vmem:[%s2177_s2 + $0x68] sm:$0xff] %v1448_v6   ;;  %1568 = vst [vmem:[%s2177_s2 + $0xe8] sm:$0xff] %v1528_v45   ;;  %v1523_v53 = vpack.c.bf16 %v2039_v46, %v2033_v32  ;;  %v1071_v3 = vmul.f32 %v1889_v54, %v1889_v54 }
 0x117   :  { %1551 = vst [vmem:[%s2177_s2 + $0x60] sm:$0xff] %v1443_v15   ;;  %v994_v21 = vadd.f32 %v1638_v56, %v993_v16  ;;  %v1127_v22 = vadd.f32 %v1126_v13, %v1064_v17 }
 0x118   :  { %1567 = vst [vmem:[%s2177_s2 + $0xe0] sm:$0xff] %v1523_v53   ;;  %v1080_v53 = vmul.f32 %v1943_v47, %v1943_v47 }
 0x119   :  { %v1128_v25 = vadd.f32 %v1127_v22, %v1065_v20  ;;  %v1642_v26 = vpop.f32.mrb[28].mxu0  ;;  %v995_v27 = vadd.f32 %v1639_v4, %v994_v21  ;;  %v2057_v4 = vpop.f32.mrb[28].mxu1  ;;  %v1072_v20 = vmul.f32 %v1895_v63, %v1895_v63 }
 0x11a   :  { %v506_v31 = vpop.f32.mrb[29].mxu0  ;;  %v1069_v55 = vmul.f32 %v1642_v26, %v1642_v26  ;;  %v2059_v6 = vpop.f32.mrb[29].mxu1 }
 0x11b   :  { %v996_v33 = vadd.f32 %v995_v27, %v506_v31  ;;  %v1067_v34 = vmul.f32 %v506_v31, %v506_v31  ;;  %v1129_v37 = vadd.f32 %v1128_v25, %v1066_v24  ;;  %v1643_v39 = vpop.f32.mrb[30].mxu0  ;;  %v2062_v13 = vpop.f32.mrb[30].mxu1  ;;  %v1075_v27 = vmul.f32 %v1913_v14, %v1913_v14 }
 0x11c   :  { %v1458_v42 = vpack.c.bf16 %v1643_v39, %v1642_v26  ;;  %v509_v44 = vpop.f32.mrb[31].mxu0  ;;  %v1070_v60 = vmul.f32 %v1643_v39, %v1643_v39  ;;  %v1538_v15 = vpack.c.bf16 %v2062_v13, %v2057_v4  ;;  %v2066_v16 = vpop.f32.mrb[31].mxu1 }
 0x11d   :  { %v1130_v48 = vadd.f32 %v1129_v37, %v1067_v34  ;;  %v1453_v49 = vpack.c.bf16 %v509_v44, %v506_v31  ;;  %v997_v50 = vadd.f32 %v996_v33, %v509_v44  ;;  %v1068_v51 = vmul.f32 %v509_v44, %v509_v44 }
 0x11e   :  { %1554 = vst [vmem:[%s2177_s2 + $0x78] sm:$0xff] %v1458_v42   ;;  %v1533_v21 = vpack.c.bf16 %v2066_v16, %v2059_v6  ;;  %1570 = vst [vmem:[%s2177_s2 + $0xf8] sm:$0xff] %v1538_v15   ;;  %v1076_v37 = vmul.f32 %v1919_v23, %v1919_v23 }
 0x11f   :  { %1553 = vst [vmem:[%s2177_s2 + $0x70] sm:$0xff] %v1453_v49   ;;  %v998_v56 = vadd.f32 %v1642_v26, %v997_v50  ;;  %v1131_v57 = vadd.f32 %v1130_v48, %v1068_v51 }
 0x120   :  { %1569 = vst [vmem:[%s2177_s2 + $0xf0] sm:$0xff] %v1533_v21  }
 0x121   :  { %v1132_v62 = vadd.f32 %v1131_v57, %v1069_v55  ;;  %v999_v1 = vadd.f32 %v1643_v39, %v998_v56  ;;  %v1077_v39 = vmul.f32 %v1911_v12, %v1911_v12 }
 0x123   :  { %v1000_v8 = vadd.f32 %v999_v1, %v1889_v54  ;;  %v1133_v9 = vadd.f32 %v1132_v62, %v1070_v60  ;;  %v1073_v54 = vmul.f32 %v1887_v52, %v1887_v52 }
 0x125   :  { %v1134_v17 = vadd.f32 %v1133_v9, %v1071_v3  ;;  %v1001_v18 = vadd.f32 %v1000_v8, %v1895_v63  ;;  %v1074_v63 = vmul.f32 %v1891_v59, %v1891_v59  ;;  %v1084_v8 = vmul.f32 %v1967_v11, %v1967_v11 }
 0x127   :  { %v1002_v22 = vadd.f32 %v1887_v52, %v1001_v18  ;;  %v1135_v24 = vadd.f32 %v1134_v17, %v1072_v20 }
 0x129   :  { %v1136_v25 = vadd.f32 %v1135_v24, %v1073_v54  ;;  %v1003_v26 = vadd.f32 %v1891_v59, %v1002_v22  ;;  %v1078_v59 = vmul.f32 %v1915_v19, %v1915_v19  ;;  %v1088_v22 = vmul.f32 %v1991_v41, %v1991_v41 }
 0x12b   :  { %v1004_v31 = vadd.f32 %v1003_v26, %v1913_v14  ;;  %v1137_v33 = vadd.f32 %v1136_v25, %v1074_v63  ;;  %v1079_v14 = vmul.f32 %v1937_v38, %v1937_v38 }
 0x12d   :  { %v1138_v34 = vadd.f32 %v1137_v33, %v1075_v27  ;;  %v1005_v52 = vadd.f32 %v1004_v31, %v1919_v23 }
 0x12f   :  { %v1006_v42 = vadd.f32 %v1911_v12, %v1005_v52  ;;  %v1139_v44 = vadd.f32 %v1138_v34, %v1076_v37  ;;  %v1081_v12 = vmul.f32 %v1935_v36, %v1935_v36  ;;  %v1092_v34 = vmul.f32 %v2015_v10, %v2015_v10 }
 0x131   :  { %v1140_v45 = vadd.f32 %v1139_v44, %v1077_v39  ;;  %v1007_v48 = vadd.f32 %v1915_v19, %v1006_v42  ;;  %v1082_v19 = vmul.f32 %v1939_v43, %v1939_v43 }
 0x133   :  { %v1008_v49 = vadd.f32 %v1007_v48, %v1937_v38  ;;  %v1141_v50 = vadd.f32 %v1140_v45, %v1078_v59  ;;  %v1083_v38 = vmul.f32 %v1961_v2, %v1961_v2  ;;  %v1096_v48 = vmul.f32 %v2039_v46, %v2039_v46 }
 0x135   :  { %v1142_v51 = vadd.f32 %v1141_v50, %v1079_v14  ;;  %v1009_v23 = vadd.f32 %v1008_v49, %v1943_v47 }
 0x137   :  { %v1010_v55 = vadd.f32 %v1935_v36, %v1009_v23  ;;  %v1143_v56 = vadd.f32 %v1142_v51, %v1080_v53  ;;  %v1085_v36 = vmul.f32 %v1959_v0, %v1959_v0 }
 0x139   :  { %v1144_v57 = vadd.f32 %v1143_v56, %v1081_v12  ;;  %v1011_v60 = vadd.f32 %v1939_v43, %v1010_v55  ;;  %v1086_v43 = vmul.f32 %v1963_v7, %v1963_v7  ;;  %v1100_v55 = vmul.f32 %v2066_v16, %v2066_v16 }
 0x13b   :  { %v1012_v62 = vadd.f32 %v1011_v60, %v1961_v2  ;;  %v1145_v1 = vadd.f32 %v1144_v57, %v1082_v19  ;;  %v1087_v2 = vmul.f32 %v1985_v30, %v1985_v30 }
 0x13d   :  { %v1146_v3 = vadd.f32 %v1145_v1, %v1083_v38  ;;  %v1013_v47 = vadd.f32 %v1012_v62, %v1967_v11 }
 0x13f   :  { %v1014_v9 = vadd.f32 %v1959_v0, %v1013_v47  ;;  %v1147_v15 = vadd.f32 %v1146_v3, %v1084_v8  ;;  %v1089_v0 = vmul.f32 %v1983_v28, %v1983_v28 }
 0x141   :  { %v1148_v17 = vadd.f32 %v1147_v15, %v1085_v36  ;;  %v1015_v18 = vadd.f32 %v1963_v7, %v1014_v9  ;;  %v1090_v7 = vmul.f32 %v1987_v35, %v1987_v35 }
 0x143   :  { %v1016_v20 = vadd.f32 %v1015_v18, %v1985_v30  ;;  %v1149_v21 = vadd.f32 %v1148_v17, %v1086_v43  ;;  %v1091_v30 = vmul.f32 %v2009_v61, %v2009_v61 }
 0x145   :  { %v1150_v54 = vadd.f32 %v1149_v21, %v1087_v2  ;;  %v1017_v11 = vadd.f32 %v1016_v20, %v1991_v41 }
 0x147   :  { %v1018_v24 = vadd.f32 %v1983_v28, %v1017_v11  ;;  %v1151_v63 = vadd.f32 %v1150_v54, %v1088_v22  ;;  %v1093_v28 = vmul.f32 %v2007_v58, %v2007_v58 }
 0x149   :  { %v1152_v25 = vadd.f32 %v1151_v63, %v1089_v0  ;;  %v1019_v26 = vadd.f32 %v1987_v35, %v1018_v24  ;;  %v1094_v35 = vmul.f32 %v2011_v5, %v2011_v5 }
 0x14b   :  { %v1020_v27 = vadd.f32 %v1019_v26, %v2009_v61  ;;  %v1153_v31 = vadd.f32 %v1152_v25, %v1090_v7  ;;  %v1095_v61 = vmul.f32 %v2033_v32, %v2033_v32 }
 0x14d   :  { %v1154_v33 = vadd.f32 %v1153_v31, %v1091_v30  ;;  %v1021_v41 = vadd.f32 %v1020_v27, %v2015_v10 }
 0x14f   :  { %v1022_v52 = vadd.f32 %v2007_v58, %v1021_v41  ;;  %v1155_v37 = vadd.f32 %v1154_v33, %v1092_v34  ;;  %v1097_v58 = vmul.f32 %v2031_v29, %v2031_v29 }
 0x151   :  { %v1156_v39 = vadd.f32 %v1155_v37, %v1093_v28  ;;  %v1023_v42 = vadd.f32 %v2011_v5, %v1022_v52  ;;  %v1098_v5 = vmul.f32 %v2035_v40, %v2035_v40 }
 0x153   :  { %v1024_v44 = vadd.f32 %v1023_v42, %v2033_v32  ;;  %v1157_v59 = vadd.f32 %v1156_v39, %v1094_v35  ;;  %v1099_v32 = vmul.f32 %v2059_v6, %v2059_v6 }
 0x155   :  { %v1158_v45 = vadd.f32 %v1157_v59, %v1095_v61  ;;  %v1025_v10 = vadd.f32 %v1024_v44, %v2039_v46 }
 0x157   :  { %v1026_v14 = vadd.f32 %v2031_v29, %v1025_v10  ;;  %v1159_v49 = vadd.f32 %v1158_v45, %v1096_v48  ;;  %v1101_v29 = vmul.f32 %v2057_v4, %v2057_v4 }
 0x159   :  { %v1160_v50 = vadd.f32 %v1159_v49, %v1097_v58  ;;  %v1027_v51 = vadd.f32 %v2035_v40, %v1026_v14  ;;  %v1102_v40 = vmul.f32 %v2062_v13, %v2062_v13 }
 0x15b   :  { %v1028_v23 = vadd.f32 %v1027_v51, %v2059_v6  ;;  %v1161_v53 = vadd.f32 %v1160_v50, %v1098_v5 }
 0x15d   :  { %v1162_v12 = vadd.f32 %v1161_v53, %v1099_v32  ;;  %v1029_v46 = vadd.f32 %v1028_v23, %v2066_v16 }
 0x15f   :  { %v1030_v56 = vadd.f32 %v2057_v4, %v1029_v46  ;;  %v1163_v19 = vadd.f32 %v1162_v12, %v1100_v55 }
 0x161   :  { %v1031_v57 = vadd.f32 %v2062_v13, %v1030_v56  ;;  %v1164_v60 = vadd.f32 %v1163_v19, %v1101_v29 }
 0x163   :  { %v1032_v6 = vrot.slane %v1031_v57, 4  ;;  %v1165_v38 = vadd.f32 %v1164_v60, %v1102_v40 }
 0x165   :  { %v1033_v62 = vadd.f32 %v1032_v6, %v1031_v57  ;;  %v1166_v1 = vrot.slane %v1165_v38, 4 }
 0x167   :  { %v1034_v3 = vrot.slane %v1033_v62, 2  ;;  %v1167_v47 = vadd.f32 %v1166_v1, %v1165_v38 }
 0x169   :  { %v1035_v8 = vadd.f32 %v1034_v3, %v1033_v62  ;;  %v1168_v16 = vrot.slane %v1167_v47, 2 }
 0x16b   :  { %v1036_v36 = vrot.slane %v1035_v8, 1  ;;  %v1169_v9 = vadd.f32 %v1168_v16, %v1167_v47 }
 0x16d   :  { %v1037_v15 = vadd.f32 %v1036_v36, %v1035_v8  ;;  %v1170_v43 = vrot.slane %v1169_v9, 1 }
 0x16f   :  { %1038 = vst [vmem:[%s2178_s3] sm:$0x1] %v1037_v15  ;;  %v1171_v4 = vadd.f32 %v1170_v43, %v1169_v9 }
 0x171   :  { %1172 = vst [vmem:[%s2179_s4] sm:$0x1] %v1171_v4 }

</bundles_post_ra>
